<compile_context>
chip_gen: v7x
topology: tpu7x:2x2x1
jax: 0.10.0
libtpu: 0.0.40
codegen_flags: <defaults>
</compile_context>

<pallas_src>
import math

import jax
import jax.numpy as jnp
from jax.experimental import pallas as pl
from jax.experimental.pallas import tpu as pltpu

_TILE_BYTES = 4 << 20  # per-buffer VMEM budget for the x tile (conservative)


def _round_up(a, b):
    return (a + b - 1) // b * b


def _linearx_kernel(x_ref, w_ref, o_ref):
    # (TM, D_eff) @ (D_eff, pack) -> (TM, pack); f32 MXU accumulation.
    o_ref[...] = jnp.dot(
        x_ref[...], w_ref[...], preferred_element_type=jnp.float32
    ).astype(o_ref.dtype)


def linearx_forward(x, weight):
    """Pallas implementation of LinearX.forward.

    x:      (..., dims) float array or None
    weight: (1, dims)  -- same shape convention as nn.Linear(dims, 1).weight
    """
    if x is None:
        return 0

    dims = weight.shape[-1]
    lead_shape = x.shape[:-1]
    m = math.prod(lead_shape) if lead_shape else 1
    out_dtype = x.dtype

    if m == 0:
        # Empty leading dims: nothing to compute, skip the kernel.
        return jnp.zeros((*lead_shape, 1), dtype=out_dtype)

    x2d = x.reshape(m, dims)
    w_col = weight.reshape(dims).astype(x.dtype)

    # ---- Lane packing for small dims (restore 128-lane density). ----
    if dims < 128 and 128 % dims == 0:
        pack = 128 // dims
    else:
        pack = 1
    d_eff = dims * pack

    if pack > 1:
        # Block-diagonal weight: w_eff[j*dims + d, k] = (j == k) * w[d]
        eye = jnp.eye(pack, dtype=x.dtype)
        w_eff = (eye[:, None, :] * w_col[None, :, None]).reshape(d_eff, pack)
    else:
        w_eff = w_col.reshape(dims, 1)

    # ---- Tile size over packed rows, VMEM-aware and multiple of 8. ----
    bytes_per_elt = jnp.dtype(x.dtype).itemsize
    m_packed = _round_up(m, pack) // pack
    budget_rows = max(8, (_TILE_BYTES // max(1, d_eff * bytes_per_elt)) // 8 * 8)
    tm = min(512, budget_rows, _round_up(m_packed, 8))
    # TODO(synk): for extremely large dims where even 8 rows of d_eff exceed
    # VMEM, add a K-reduction grid axis with an f32 accumulator scratch.

    m_packed_pad = _round_up(m_packed, tm)
    m_rows_pad = m_packed_pad * pack

    if m_rows_pad != m:
        x2d = jnp.pad(x2d, ((0, m_rows_pad - m), (0, 0)))
    x_packed = x2d.reshape(m_packed_pad, d_eff)

    grid = (m_packed_pad // tm,)

    out_packed = pl.pallas_call(
        _linearx_kernel,
        out_shape=jax.ShapeDtypeStruct((m_packed_pad, pack), out_dtype),
        grid=grid,
        in_specs=[
            pl.BlockSpec((tm, d_eff), lambda i: (i, 0)),
            pl.BlockSpec((d_eff, pack), lambda i: (0, 0)),
        ],
        out_specs=pl.BlockSpec((tm, pack), lambda i: (i, 0)),
        compiler_params=pltpu.CompilerParams(
            dimension_semantics=("parallel",),
        ),
        cost_estimate=pl.CostEstimate(
            flops=2 * m * dims,
            transcendentals=0,
            bytes_accessed=bytes_per_elt * (m * dims + dims + m),
        ),
    )(x_packed, w_eff)

    # Unpack: row r of out_packed holds outputs for original rows
    # r*pack .. r*pack+pack-1.
    out = out_packed.reshape(m_rows_pad, 1)[:m]
    return out.reshape(*lead_shape, 1)


if __name__ == "__main__":
    key = jax.random.PRNGKey(0)
    kx, kw, kx2, kx3, kw3 = jax.random.split(key, 5)

    # ---- Case 1: small dims (32 < 128) -> lane-packed path. ----
    dims = 32
    batch, seq = 2, 8
    x = jax.random.normal(kx, (batch, seq, dims), dtype=jnp.float32)
    bound = 1.0 / (dims ** 0.5)
    weight = jax.random.uniform(
        kw, (1, dims), dtype=jnp.float32, minval=-bound, maxval=bound
    )
    y = jax.block_until_ready(linearx_forward(x, weight))
    y_ref = x @ weight.T
    assert y.shape == (batch, seq, 1), y.shape
    assert jnp.allclose(y, y_ref, atol=1e-5, rtol=1e-5)

    # ---- Case 2: leading size not divisible by pack/tile (padding path). ----
    x2 = jax.random.normal(kx2, (3, 5, dims), dtype=jnp.float32)
    y2 = jax.block_until_ready(linearx_forward(x2, weight))
    assert y2.shape == (3, 5, 1), y2.shape
    assert jnp.allclose(y2, x2 @ weight.T, atol=1e-5, rtol=1e-5)

    # ---- Case 3: dims >= 128 -> no packing, tiled streaming path. ----
    dims3 = 256
    x3 = jax.random.normal(kx3, (2, 7, dims3), dtype=jnp.float32)
    bound3 = 1.0 / (dims3 ** 0.5)
    weight3 = jax.random.uniform(
        kw3, (1, dims3), dtype=jnp.float32, minval=-bound3, maxval=bound3
    )
    y3 = jax.block_until_ready(linearx_forward(x3, weight3))
    assert y3.shape == (2, 7, 1), y3.shape
    assert jnp.allclose(y3, x3 @ weight3.T, atol=1e-5, rtol=1e-5)

    # ---- Case 4: the x is None branch (returns 0, no kernel). ----
    assert linearx_forward(None, weight) == 0

    print("KERNEL_OK")
</pallas_src>

<mosaic_0001>
module attributes {stable_mosaic.version = 11 : i64} {
  func.func @_linearx_kernel(%arg0: i32, %arg1: memref<8x128xf32, #tpu.memory_space<vmem>>, %arg2: memref<128x4xf32, #tpu.memory_space<vmem>>, %arg3: memref<8x4xf32, #tpu.memory_space<vmem>>) attributes {dimension_semantics = [#tpu.dimension_semantics<parallel>], iteration_bounds = array<i64: 1>, scalar_prefetch = 0 : i64, scratch_operands = 0 : i64, tpu.core_type = #tpu.core_type<tc>, window_params = [{transform_indices = @transform_0, window_bounds = array<i64: 8, 128>}, {pipeline_mode = #tpu.pipeline_mode<synchronous>, transform_indices = @transform_1, window_bounds = array<i64: 128, 4>}, {transform_indices = @transform_2, window_bounds = array<i64: 8, 4>}]} {
    %c0 = arith.constant 0 : index
    %c0_0 = arith.constant 0 : index
    %0 = vector.load %arg1[%c0, %c0_0] : memref<8x128xf32, #tpu.memory_space<vmem>>, vector<8x128xf32>
    %c0_1 = arith.constant 0 : index
    %c0_2 = arith.constant 0 : index
    %1 = vector.load %arg2[%c0_1, %c0_2] : memref<128x4xf32, #tpu.memory_space<vmem>>, vector<128x4xf32>
    %cst = arith.constant dense<0.000000e+00> : vector<8x4xf32>
    %2 = tpu.matmul %0, %1, %cst {dimension_numbers = #tpu.dot_dimension_numbers<[1], [0], [0], [1], [0, 0, 1, 1], [], []>} : vector<8x128xf32>, vector<128x4xf32>, vector<8x4xf32> -> vector<8x4xf32>
    %c0_3 = arith.constant 0 : index
    %c0_4 = arith.constant 0 : index
    %3 = vector.load %arg3[%c0_3, %c0_4] : memref<8x4xf32, #tpu.memory_space<vmem>>, vector<8x4xf32>
    tpu.vector_store %arg3[%c0_3, %c0_4], %2 {strides = array<i32>} : memref<8x4xf32, #tpu.memory_space<vmem>>, vector<8x4xf32>,
    return
  }
  func.func @transform_0(%arg0: i32) -> (i32, i32) {
    %c0_i32 = arith.constant 0 : i32
    %c0_i32_0 = arith.constant 0 : i32
    return %arg0, %c0_i32 : i32, i32
  }
  func.func @transform_1(%arg0: i32) -> (i32, i32) {
    %c0_i32 = arith.constant 0 : i32
    %c0_i32_0 = arith.constant 0 : i32
    %c0_i32_1 = arith.constant 0 : i32
    return %c0_i32, %c0_i32_0 : i32, i32
  }
  func.func @transform_2(%arg0: i32) -> (i32, i32) {
    %c0_i32 = arith.constant 0 : i32
    %c0_i32_0 = arith.constant 0 : i32
    return %arg0, %c0_i32 : i32, i32
  }
}

</mosaic_0001>

<bundles_post_ra>
// kernel: tpu_custom_call.1
= control target key start
LH: loop header
LB: loop body
LE: loop exit
PB: predicated region body
PF: predicated region fallthrough
CT: control target
= control target key end

     0   :  { %v183_v0 = vmov 0.0|0.0   ;;  %vm184_vm0 = vmmov 0   ;;  %v185_v4 = vmov 0.0   ;;  %vm98_vm1 = vcmask 31744   ;;  %s255_s1 = inlined_call_operand.vmem [shape: f32[128,4], index: 1, kind: input, shape index: {}]   ;;  %s256_s0 = inlined_call_operand.vmem [shape: f32[8,128], index: 0, kind: input, shape index: {}]   ;;  %s257_s2 = inlined_call_operand.vmem [shape: f32[8,4], index: 2, kind: output, shape index: {}]  }
   0x1   :  { %156 = vmatprep.subr.bf16.mxu0 %v183_v0  ;;  %v12_v1 = vld [vmem:[%s255_s1] sm:$0xff]  ;;  %v13_v2 = vld [vmem:[%s255_s1 + $0x8] sm:$0xff]  ;;  %v14_v3 = vld [vmem:[%s255_s1 + $0x10] sm:$0xff]  ;;  %153 = vmatprep.mubr.msk.f32.mxu0 %vm184_vm0, %v185_v4 }
   0x2   :  { %v157_v5 = vpack.c.bf16 %v13_v2, %v12_v1  ;;  %v15_v6 = vld [vmem:[%s255_s1 + $0x18] sm:$0xff]  ;;  %v16_v8 = vld [vmem:[%s255_s1 + $0x20] sm:$0xff]  ;;  %v17_v9 = vld [vmem:[%s255_s1 + $0x28] sm:$0xff] }
   0x3   :  { %v160_v7 = vpack.c.bf16 %v15_v6, %v14_v3  ;;  %v163_v10 = vpack.c.bf16 %v17_v9, %v16_v8  ;;  %v18_v11 = vld [vmem:[%s255_s1 + $0x30] sm:$0xff]  ;;  %v19_v12 = vld [vmem:[%s255_s1 + $0x38] sm:$0xff]  ;;  %v20_v14 = vld [vmem:[%s255_s1 + $0x40] sm:$0xff] }
   0x4   :  { %158 = vmatpush3.bf16.msra.mxu0 %v157_v5  ;;  %v166_v13 = vpack.c.bf16 %v19_v12, %v18_v11  ;;  %v21_v15 = vld [vmem:[%s255_s1 + $0x48] sm:$0xff]  ;;  %v22_v17 = vld [vmem:[%s255_s1 + $0x50] sm:$0xff]  ;;  %v23_v18 = vld [vmem:[%s255_s1 + $0x58] sm:$0xff] }
   0x5   :  { %159 = vmatprep.subr.bf16.mxu0 %v183_v0  ;;  %v169_v16 = vpack.c.bf16 %v21_v15, %v20_v14  ;;  %v172_v19 = vpack.c.bf16 %v23_v18, %v22_v17  ;;  %v24_v20 = vld [vmem:[%s255_s1 + $0x60] sm:$0xff]  ;;  %v25_v21 = vld [vmem:[%s255_s1 + $0x68] sm:$0xff]  ;;  %v26_v23 = vld [vmem:[%s255_s1 + $0x70] sm:$0xff] }
   0x6   :  { %v175_v22 = vpack.c.bf16 %v25_v21, %v24_v20  ;;  %v27_v24 = vld [vmem:[%s255_s1 + $0x78] sm:$0xff]  ;;  %v11_v26 = vld [vmem:[%s256_s0] sm:$0xff] }
   0x7   :  { %v178_v25 = vpack.c.bf16 %v27_v24, %v26_v23 }
   0x8   :  { %161 = vmatpush3.bf16.msra.mxu0 %v160_v7 }
   0x9   :  { %162 = vmatprep.subr.bf16.mxu0 %v183_v0 }
   0xc   :  { %164 = vmatpush3.bf16.msra.mxu0 %v163_v10 }
   0xd   :  { %165 = vmatprep.subr.bf16.mxu0 %v183_v0 }
  0x10   :  { %167 = vmatpush3.bf16.msra.mxu0 %v166_v13 }
  0x11   :  { %168 = vmatprep.subr.bf16.mxu0 %v183_v0 }
  0x14   :  { %170 = vmatpush3.bf16.msra.mxu0 %v169_v16 }
  0x15   :  { %171 = vmatprep.subr.bf16.mxu0 %v183_v0 }
  0x18   :  { %173 = vmatpush3.bf16.msra.mxu0 %v172_v19 }
  0x19   :  { %174 = vmatprep.subr.bf16.mxu0 %v183_v0 }
  0x1c   :  { %176 = vmatpush3.bf16.msra.mxu0 %v175_v22 }
  0x1d   :  { %177 = vmatprep.subr.bf16.mxu0 %v183_v0 }
  0x20   :  { %179 = vmatpush3.bf16.msra.mxu0 %v178_v25 }
  0x23   :  { %154 = vmatmul.mubr.f32.vlgmr.msra.gmra.mrb[0].mxu0 %v11_v26 }
  0xf6   :  { %v94_v27 = vpop.f32.mrb[0].mxu0 }
  0xf7   :  { %99 = vst.msk [vmem:[%s257_s2] sm:$0xff] %vm98_vm1, %v94_v27  ;;  %v155_v28 = vpop.f32.mrb[1].mxu0 }

</bundles_post_ra>
